<compile_context>
chip_gen: v5e
topology: v5e:2x2
jax: 0.10.0
libtpu: 0.0.40
codegen_flags: <defaults>
</compile_context>

<pallas_src>
import math
import functools

import jax
import jax.numpy as jnp
from jax.experimental import pallas as pl
from jax.experimental.pallas import tpu as pltpu


NEG_INF = -1e30  # large finite negative: avoids NaN from (-inf) - (-inf)


# ----------------------------------------------------------------------------
# Kernel 1: one-shot K/V projection (bf16 in HBM), computed once per KV tile.
# ----------------------------------------------------------------------------
def _kv_proj_kernel(x_ref, wkv_ref, bkv_ref, kv_ref):
    kv = jnp.dot(x_ref[0], wkv_ref[...], preferred_element_type=jnp.float32)
    kv_ref[0] = (kv + bkv_ref[...]).astype(kv_ref.dtype)


# ----------------------------------------------------------------------------
# Kernel 2: flash-style causal attention over a lower-triangular block grid,
# with fused Q projection (at the start of each query-tile run) and fused
# output projection (on the diagonal / final block of each run).
# ----------------------------------------------------------------------------
def _flash_attn_kernel(qi_map_ref, ki_map_ref,                       # prefetch
                       xq_ref, kv_ref, wq_ref, bq_ref, wproj_ref, bproj_ref,
                       o_ref,
                       q_scratch, m_scratch, l_scratch, acc_scratch,
                       *, n_heads, head_dim, q_block, kv_block):
    D = n_heads * head_dim
    t = pl.program_id(1)
    qi = qi_map_ref[t]
    ki = ki_map_ref[t]
    on_diag = ki == qi

    @pl.when(ki == 0)
    def _init():
        # Fused, lane-dense Q projection for this query tile (scale folded
        # into wq/bq on the host). bf16 MXU inputs, f32 accumulation.
        q = jnp.dot(xq_ref[0], wq_ref[...], preferred_element_type=jnp.float32)
        q_scratch[...] = (q + bq_ref[...]).astype(jnp.bfloat16)
        m_scratch[...] = jnp.full_like(m_scratch, NEG_INF)
        l_scratch[...] = jnp.zeros_like(l_scratch)
        acc_scratch[...] = jnp.zeros_like(acc_scratch)

    kv = kv_ref[0]                     # (TK, 2D) bf16, projected once per tile
    q_all = q_scratch[...]             # (TQ, D) bf16

    def attend(masked):
        if masked:
            # Local (within-block) causal mask; q_block == kv_block so the
            # diagonal block mask is simply the local lower triangle.
            row = jax.lax.broadcasted_iota(jnp.int32, (q_block, kv_block), 0)
            col = jax.lax.broadcasted_iota(jnp.int32, (q_block, kv_block), 1)
            causal = row >= col
        for h in range(n_heads):       # static, small head count
            lo, hi = h * head_dim, (h + 1) * head_dim
            q_h = q_all[:, lo:hi]                      # (TQ, hd)
            k_h = kv[:, lo:hi]                         # (TK, hd)
            v_h = kv[:, D + lo:D + hi]                 # (TK, hd)

            # Contract over head_dim directly — no materialized k.T.
            s = jax.lax.dot_general(q_h, k_h, (((1,), (1,)), ((), ())),
                                    preferred_element_type=jnp.float32)
            if masked:
                s = jnp.where(causal, s, NEG_INF)

            m_prev = m_scratch[:, h:h + 1]             # (TQ, 1)
            m_new = jnp.maximum(m_prev, jnp.max(s, axis=-1, keepdims=True))
            alpha = jnp.exp(m_prev - m_new)
            p = jnp.exp(s - m_new)
            l_scratch[:, h:h + 1] = (alpha * l_scratch[:, h:h + 1]
                                     + jnp.sum(p, axis=-1, keepdims=True))
            acc_scratch[:, lo:hi] = alpha * acc_scratch[:, lo:hi] + jnp.dot(
                p.astype(jnp.bfloat16), v_h, preferred_element_type=jnp.float32)
            m_scratch[:, h:h + 1] = m_new

    # Off-diagonal blocks: no mask work at all.
    @pl.when(jnp.logical_not(on_diag))
    def _off_diag():
        attend(masked=False)

    # Diagonal block: masked update, then finalize (it is the last KV block
    # of this query-tile run in the lower-triangular traversal).
    @pl.when(on_diag)
    def _diag_and_finalize():
        attend(masked=True)

        # Deferred softmax normalization, lane-dense (TQ, D) accumulator, then
        # a single full-D-contraction projection matmul (no per-head narrow
        # matmuls, no lane-axis concat of head fragments).
        inv_l = pl.reciprocal(l_scratch[...], approx=True)      # (TQ, H)
        for h in range(n_heads):
            lo, hi = h * head_dim, (h + 1) * head_dim
            acc_scratch[:, lo:hi] = acc_scratch[:, lo:hi] * inv_l[:, h:h + 1]
        out = jnp.dot(acc_scratch[...].astype(jnp.bfloat16), wproj_ref[...],
                      preferred_element_type=jnp.float32) + bproj_ref[...]
        o_ref[0] = out.astype(o_ref.dtype)


# ----------------------------------------------------------------------------
# Host wrapper
# ----------------------------------------------------------------------------
def causal_self_attention(x, wkqv, bkqv, wproj, bproj, *, n_heads, q_block=None):
    """x: (B, N, D). wkqv: (H, D, 3*hd) per-head columns ordered [k | q | v]
    (kernel computes x @ W + b, i.e. torch's x @ weight.T + bias with weight
    (3*hd, D)). bkqv: (H, 1, 3*hd). wproj: (D, D) used as x @ wproj. bproj: (1, D)."""
    B, N, D = x.shape
    assert D % n_heads == 0
    head_dim = D // n_heads
    scale = 1.0 / math.sqrt(head_dim)

    # Host-side weight re-layout: fuse per-head kqv Linears into lane-dense
    # (D, D)/(D, 2D) matrices, fold the attention scale into W_q / b_q, and
    # pre-cast matmul weights (and activations) to bf16; accumulation stays f32.
    wkqv_r = wkqv.reshape(n_heads, D, 3, head_dim)            # (H, D, 3, hd)
    wk = wkqv_r[:, :, 0].transpose(1, 0, 2).reshape(D, D)
    wq = wkqv_r[:, :, 1].transpose(1, 0, 2).reshape(D, D) * scale
    wv = wkqv_r[:, :, 2].transpose(1, 0, 2).reshape(D, D)
    bkqv_r = bkqv.reshape(n_heads, 3, head_dim)
    bk = bkqv_r[:, 0].reshape(1, D)
    bq = (bkqv_r[:, 1].reshape(1, D) * scale).astype(jnp.float32)
    bv = bkqv_r[:, 2].reshape(1, D)
    wkv = jnp.concatenate([wk, wv], axis=1).astype(jnp.bfloat16)   # (D, 2D)
    bkv = jnp.concatenate([bk, bv], axis=1).astype(jnp.float32)    # (1, 2D)
    wq_b = wq.astype(jnp.bfloat16)
    wproj_b = wproj.astype(jnp.bfloat16)
    bproj_f = bproj.astype(jnp.float32)

    x_b = x.astype(jnp.bfloat16)   # halve activation HBM traffic / VMEM footprint

    # Generation-aware tile size and scoped-VMEM limit.
    try:
        vmem_cap = pltpu.get_tpu_info().vmem_capacity_bytes
    except Exception:
        vmem_cap = 64 * 1024 * 1024           # conservative (v7x per-TC VMEM)
    vmem_limit = int(max(32 * 1024 * 1024, (vmem_cap * 3) // 4))
    if q_block is None:
        # 512-tiles on 128-MiB-VMEM parts (v5e/v6e), 256 on v7x (64 MiB/TC).
        q_block = 512 if vmem_cap >= 96 * 1024 * 1024 else 256

    tq = min(q_block, N)
    assert N % tq == 0, "sequence length must be divisible by the query tile"
    n_q = N // tq
    tk = tq  # TODO(synk): decouple kv_block from q_block on v7x if TQ must shrink.

    # Grid-invariant weights/biases: single-buffered (no double-buffer DMA).
    def const_spec(shape):
        index_map = lambda *a: (0,) * len(shape)
        try:
            return pl.BlockSpec(shape, index_map, pipeline_mode=pl.Buffered(1))
        except (AttributeError, TypeError):
            return pl.BlockSpec(shape, index_map)

    # ---- pass 1: project K/V once, store bf16 [K|V] in HBM -----------------
    kv = pl.pallas_call(
        _kv_proj_kernel,
        out_shape=jax.ShapeDtypeStruct((B, N, 2 * D), jnp.bfloat16),
        grid_spec=pltpu.PrefetchScalarGridSpec(
            num_scalar_prefetch=0,
            grid=(B, N // tk),
            in_specs=[
                pl.BlockSpec((1, tk, D), lambda b, i: (b, i, 0)),
                const_spec((D, 2 * D)),                      # wkv (bf16)
                const_spec((1, 2 * D)),                      # bkv (f32)
            ],
            out_specs=pl.BlockSpec((1, tk, 2 * D), lambda b, i: (b, i, 0))),
        compiler_params=pltpu.CompilerParams(
            dimension_semantics=("parallel", "parallel"),
            vmem_limit_bytes=vmem_limit),
    )(x_b, wkv, bkv)

    # ---- pass 2: flash attention over a lower-triangular block grid --------
    # Scalar-prefetched block-index arrays: only blocks with ki <= qi exist,
    # so no grid step is spent on fully-masked work.
    qi_list, ki_list = [], []
    for q_idx in range(n_q):
        for k_idx in range(q_idx + 1):
            qi_list.append(q_idx)
            ki_list.append(k_idx)
    qi_map = jnp.asarray(qi_list, dtype=jnp.int32)
    ki_map = jnp.asarray(ki_list, dtype=jnp.int32)
    n_steps = len(qi_list)                      # n_q * (n_q + 1) // 2

    kernel = functools.partial(_flash_attn_kernel, n_heads=n_heads,
                               head_dim=head_dim, q_block=tq, kv_block=tk)

    return pl.pallas_call(
        kernel,
        out_shape=jax.ShapeDtypeStruct((B, N, D), x.dtype),
        grid_spec=pltpu.PrefetchScalarGridSpec(
            num_scalar_prefetch=2,
            grid=(B, n_steps),
            in_specs=[
                # query tile of x (constant within a qi-run -> fetched once)
                pl.BlockSpec((1, tq, D), lambda b, t, qm, km: (b, qm[t], 0)),
                # pre-projected bf16 [K|V] tile
                pl.BlockSpec((1, tk, 2 * D), lambda b, t, qm, km: (b, km[t], 0)),
                const_spec((D, D)),        # wq (scaled, bf16)
                const_spec((1, D)),        # bq (scaled, f32)
                const_spec((D, D)),        # wproj (bf16)
                const_spec((1, D)),        # bproj (f32)
            ],
            out_specs=pl.BlockSpec((1, tq, D), lambda b, t, qm, km: (b, qm[t], 0)),
            scratch_shapes=[
                pltpu.VMEM((tq, D), jnp.bfloat16),        # projected Q tile
                pltpu.VMEM((tq, n_heads), jnp.float32),   # running max (lane-packed)
                pltpu.VMEM((tq, n_heads), jnp.float32),   # running denom (lane-packed)
                pltpu.VMEM((tq, D), jnp.float32),         # unnormalized O (lane-dense)
            ]),
        compiler_params=pltpu.CompilerParams(
            dimension_semantics=("parallel", "arbitrary"),
            vmem_limit_bytes=vmem_limit),
    )(qi_map, ki_map, x_b, kv, wq_b, bq, wproj_b, bproj_f)


# ----------------------------------------------------------------------------
# Pure-JAX f32 reference of the same forward pass.
# ----------------------------------------------------------------------------
def reference(x, wkqv, bkqv, wproj, bproj, *, n_heads):
    B, N, D = x.shape
    head_dim = D // n_heads
    causal = jnp.tril(jnp.ones((N, N), dtype=bool))
    heads = []
    for h in range(n_heads):
        kqv = x @ wkqv[h] + bkqv[h, 0]
        k, q, v = (kqv[..., :head_dim],
                   kqv[..., head_dim:2 * head_dim],
                   kqv[..., 2 * head_dim:])
        s = jnp.einsum("bnd,bmd->bnm", q, k) / math.sqrt(head_dim)
        s = jnp.where(causal[None], s, -jnp.inf)
        a = jax.nn.softmax(s, axis=-1)
        heads.append(jnp.einsum("bnm,bmd->bnd", a, v))
    sa = jnp.concatenate(heads, axis=-1)
    return sa @ wproj + bproj[0]


if __name__ == "__main__":
    B, N = 2, 8                 # batch, seq
    embed_dim, n_heads = 32, 4  # D, H -> head_dim = 8
    head_dim = embed_dim // n_heads

    key = jax.random.PRNGKey(0)
    kx, k1, k2, k3, k4 = jax.random.split(key, 5)

    x = jax.random.normal(kx, (B, N, embed_dim), dtype=jnp.float32)
    # Deterministic synthetic parameters (PyTorch-like small init).
    wkqv = 0.05 * jax.random.normal(k1, (n_heads, embed_dim, 3 * head_dim), jnp.float32)
    bkqv = 0.05 * jax.random.normal(k2, (n_heads, 1, 3 * head_dim), jnp.float32)
    wproj = 0.05 * jax.random.normal(k3, (embed_dim, embed_dim), jnp.float32)
    bproj = 0.05 * jax.random.normal(k4, (1, embed_dim), jnp.float32)

    out = causal_self_attention(x, wkqv, bkqv, wproj, bproj, n_heads=n_heads)
    out = jax.block_until_ready(out)

    ref = reference(x, wkqv, bkqv, wproj, bproj, n_heads=n_heads)
    assert out.shape == (B, N, embed_dim)
    # Tolerance reflects bf16 MXU inputs (f32 accumulation / softmax stats).
    assert jnp.allclose(out, ref, atol=2e-2, rtol=2e-2), "mismatch vs reference"

    print("KERNEL_OK")
</pallas_src>

<mosaic_0001>
module attributes {stable_mosaic.version = 11 : i64} {
  func.func @_kv_proj_kernel(%arg0: i32, %arg1: i32, %arg2: memref<1x8x32xbf16, #tpu.memory_space<vmem>>, %arg3: memref<32x64xbf16, #tpu.memory_space<vmem>>, %arg4: memref<1x64xf32, #tpu.memory_space<vmem>>, %arg5: memref<1x8x64xbf16, #tpu.memory_space<vmem>>) attributes {dimension_semantics = [#tpu.dimension_semantics<parallel>, #tpu.dimension_semantics<parallel>], iteration_bounds = array<i64: 2, 1>, scalar_prefetch = 0 : i64, scratch_operands = 0 : i64, tpu.core_type = #tpu.core_type<tc>, window_params = [{transform_indices = @transform_0, window_bounds = array<i64: 1, 8, 32>}, {pipeline_mode = #tpu.pipeline_mode<synchronous>, transform_indices = @transform_1, window_bounds = array<i64: 32, 64>}, {pipeline_mode = #tpu.pipeline_mode<synchronous>, transform_indices = @transform_2, window_bounds = array<i64: 1, 64>}, {transform_indices = @transform_3, window_bounds = array<i64: 1, 8, 64>}]} {
    %c0 = arith.constant 0 : index
    %c0_0 = arith.constant 0 : index
    %c0_1 = arith.constant 0 : index
    %0 = vector.load %arg2[%c0, %c0_0, %c0_1] : memref<1x8x32xbf16, #tpu.memory_space<vmem>>, vector<1x8x32xbf16>
    %1 = vector.shape_cast %0 : vector<1x8x32xbf16> to vector<8x32xbf16>
    %c0_2 = arith.constant 0 : index
    %c0_3 = arith.constant 0 : index
    %2 = vector.load %arg3[%c0_2, %c0_3] : memref<32x64xbf16, #tpu.memory_space<vmem>>, vector<32x64xbf16>
    %cst = arith.constant dense<0.000000e+00> : vector<8x64xf32>
    %3 = tpu.matmul %1, %2, %cst {dimension_numbers = #tpu.dot_dimension_numbers<[1], [0], [0], [1], [0, 0, 1, 1], [], []>} : vector<8x32xbf16>, vector<32x64xbf16>, vector<8x64xf32> -> vector<8x64xf32>
    %c0_4 = arith.constant 0 : index
    %c0_5 = arith.constant 0 : index
    %4 = vector.load %arg4[%c0_4, %c0_5] : memref<1x64xf32, #tpu.memory_space<vmem>>, vector<1x64xf32>
    %5 = vector.broadcast %4 : vector<1x64xf32> to vector<8x64xf32>
    %6 = arith.addf %3, %5 : vector<8x64xf32>
    %7 = arith.truncf %6 : vector<8x64xf32> to vector<8x64xbf16>
    %c0_6 = arith.constant 0 : index
    %c0_7 = arith.constant 0 : index
    %c0_8 = arith.constant 0 : index
    %8 = vector.load %arg5[%c0_6, %c0_7, %c0_8] : memref<1x8x64xbf16, #tpu.memory_space<vmem>>, vector<1x8x64xbf16>
    %9 = vector.shape_cast %8 : vector<1x8x64xbf16> to vector<8x64xbf16>
    %10 = vector.shape_cast %7 : vector<8x64xbf16> to vector<1x8x64xbf16>
    tpu.vector_store %arg5[%c0_6, %c0_7, %c0_8], %10 {strides = array<i32>} : memref<1x8x64xbf16, #tpu.memory_space<vmem>>, vector<1x8x64xbf16>,
    return
  }
  func.func @transform_0(%arg0: i32, %arg1: i32) -> (i32, i32, i32) {
    %c0_i32 = arith.constant 0 : i32
    %c0_i32_0 = arith.constant 0 : i32
    return %arg0, %arg1, %c0_i32 : i32, i32, i32
  }
  func.func @transform_1(%arg0: i32, %arg1: i32) -> (i32, i32) {
    %c0_i32 = arith.constant 0 : i32
    %c0_i32_0 = arith.constant 0 : i32
    %c0_i32_1 = arith.constant 0 : i32
    return %c0_i32, %c0_i32_0 : i32, i32
  }
  func.func @transform_2(%arg0: i32, %arg1: i32) -> (i32, i32) {
    %c0_i32 = arith.constant 0 : i32
    %c0_i32_0 = arith.constant 0 : i32
    %c0_i32_1 = arith.constant 0 : i32
    return %c0_i32, %c0_i32_0 : i32, i32
  }
  func.func @transform_3(%arg0: i32, %arg1: i32) -> (i32, i32, i32) {
    %c0_i32 = arith.constant 0 : i32
    %c0_i32_0 = arith.constant 0 : i32
    return %arg0, %arg1, %c0_i32 : i32, i32, i32
  }
}

</mosaic_0001>

<bundles_post_ra>
// kernel: tpu_custom_call.1
= control target key start
LH: loop header
LB: loop body
LE: loop exit
PB: predicated region body
PF: predicated region fallthrough
CT: control target
= control target key end

     0   :  { %8 = vsyncpa [#allocation3], 0  ;;  %s790_s0 = inlined_call_operand.hbm [shape: bf16[2,8,32], index: 0, kind: input, shape index: {}]   ;;  %s791_s1 = inlined_call_operand.hbm [shape: bf16[32,64], index: 1, kind: input, shape index: {}]   ;;  %s792_s2 = inlined_call_operand.vmem [shape: f32[1,64], index: 2, kind: input, shape index: {}]   ;;  %s793_s3 = inlined_call_operand.hbm [shape: bf16[2,8,64], index: 3, kind: output, shape index: {}]  }
   0x1   :  { %10 = vsyncpa [#allocation3 + $0x1], 0 }
   0x2   :  { %11 = vsyncpa [#allocation6], 0 }
   0x3   :  { %12 = vsyncpa [#allocation4], 0 }
   0x4   :  { %14 = vsyncpa [#allocation4 + $0x1], 0  ;;  %s644_s12 = smov 0   ;;  %s646_s13 = smov 0  }
   0x5   :  { %s648_s14 = smov 0   ;;  %s650_s15 = smov 0  }
   0x6   :  { %s652_s16 = smov 0   ;;  %s654_s17 = smov 0  }
   0x7 LB: > { %s371_s18 = sadd.s32 4294967295, %s619_s17   ;;  %p373_p0 = scmp.ge.s32.totalorder %s619_s17, 1  ;;  %s619_s17 = sphi %s654_s17, %s20_s17   ;;  %s615_s16 = sphi %s652_s16, %s804_s16   ;;  %s611_s15 = sphi %s650_s15, %s803_s15   ;;  %s607_s14 = sphi %s648_s14, %s802_s14   ;;  %s603_s13 = sphi %s646_s13, %s801_s13   ;;  %s599_s12 = sphi %s644_s12, %s800_s12  }
   0x8   : > { %p676_p1 = scmp.eq.s32.totalorder %s371_s18, 0  ;;  %p135_p2 = scmp.lt.s32.totalorder %s619_s17, 3 }
   0x9   : > { %s146_s22 = sshll.u32 %s791_s1, 4  ;;  %s621_s24 = smov [#allocation5]   ;;  %s147_s22 = int_to_ptr.hbm [resolvable:$true] %s146_s22 }
   0xa   : > { %p684_p3 = pnand %p373_p0, %p135_p2  ;;  %s148_s25 = sshll.u32 %s621_s24, 4  ;;  %s149_s25 = int_to_ptr.vmem [resolvable:$true] %s148_s25 }
   0xb   : > { %p375_p6 = scmp.ge.s32.totalorder %s619_s17, 2  ;;  %s622_s26 = smov 64  }
   0xc   : > { %p405_p4 = pneg %p684_p3  ;;  %s623_s27 = smov 4  }
   0xd   : > { %s372_s28 = sadd.s32 4294967294, %s619_s17   ;;  %s32_s29 = sadd.s32 1, %s615_s16 }
   0xe   : > { %p406_p5 = pnand %p405_p4, %p676_p1  ;;  %s41_s30 = sadd.s32 1, %s607_s14 }
   0xf   : > { %p34_p7 = scmp.ge.s32.totalorder %s32_s29, 2  ;;  %p48_p8 = scmp.ne.s32.totalorder %s607_s14, %s603_s13 }
  0x10   : > { %408 = dma.hbm_to_vmem [thread:$0]  (!%p406_p5), %s147_s22, 256, %s149_s25, [#allocation6], %s622_s26, %s622_s26, %s623_s27  }
  0x11   : > { %p49_p9 = scmp.eq.s32.totalorder %s619_s17, 0  ;;  %p54_p10 = scmp.ne.s32.totalorder %s603_s13, %s599_s12 }
  0x12   : > { %s806_s29 = smov (%p34_p7, %s32_s29), 0  ;;  %p122_p13 = scmp.eq.s32.totalorder %s371_s18, 1 }
  0x13   : > { %p703_p11 = por %p49_p9, %p48_p8  ;;  %p709_p12 = por %p676_p1, %p54_p10 }
  0x14   : > { %s36_s6 = ssub.s32 %s615_s16, %s806_s29  ;;  %p128_p2 = scmp.eq.s32.totalorder %s372_s28, 1 }
  0x15   : > { %p39_p0 = scmp.eq.s32.totalorder %s36_s6, 0  ;;  %p715_p4 = por %p122_p13, %p48_p8 }
  0x16   : > { %p418_p5 = scmp.lt.s32.totalorder %s619_s17, 2  ;;  %p723_p7 = por %p128_p2, %p54_p10 }
  0x17   : > { %s721_s8 = scalar_select %p39_p0, %s607_s14, %s41_s30  }
  0x18   : > { %s165_s10 = sand.u32 1, %s607_s14   ;;  %s377_s20 = sshll.u32 %s615_s16, 2 }
  0x19   : > { %s376_s11 = sshll.u32 %s165_s10, 2  ;;  %s174_s18 = scalar_lea.hbm %s790_s0, %s377_s20 }
  0x1a   : > { %s169_s24 = scalar_lea.vmem [#allocation2], %s376_s11  ;;  %s176_s26 = sshll.u32 %s174_s18, 4  ;;  %s177_s26 = int_to_ptr.hbm [resolvable:$true] %s176_s26 }
  0x1b   : > { %s178_s25 = sshll.u32 %s169_s24, 4  ;;  %p410_p8 = pnand %p418_p5, %p703_p11  ;;  %s179_s25 = int_to_ptr.vmem [resolvable:$true] %s178_s25 }
  0x1c   : > { %s166_s27 = scalar_lea.sflag [#allocation3], %s165_s10  ;;  %187 = sbr.rel (%p684_p3) target bundleno = 178 (0xb2), region = 32 }
  0x1d   : > { %412 = dma.hbm_to_vmem [thread:$0]  (!%p410_p8), %s177_s26, 64, %s179_s25, %s166_s27  }
  0x1e   : > { %s737_s28 = sand.u32 (!%p684_p3), 1, %s603_s13  }
  0x1f   : > { %s379_s30 = sshll.u32 (!%p684_p3), %s737_s28, 2  ;;  %s190_s6 = scalar_lea.sflag (!%p684_p3), [#allocation3], %s737_s28 }
  0x20   : > { %s193_s11 = scalar_lea.vmem (!%p684_p3), [#allocation2], %s379_s30 }
  0x21   : > { %586 = dma.done.wait (%p709_p12), %s190_s6, 64  }
  0x22   : > { %588 = vsyncadd (%p709_p12), %s190_s6, 4294967232 }
  0x23   : > { %590 = dma.done.wait (%p676_p1), [#allocation6], 256  }
  0x24   : > { %592 = vsyncadd (%p676_p1), [#allocation6], 4294967040  ;;  %v396_v0 = vld [vmem:[#allocation5 + $0x8] sm:$0xff]  ;;  %v395_v1 = vld [vmem:[#allocation5] sm:$0xff]  ;;  %vm244_vm0 = vcmask 261120   ;;  %s392_s23 = sshll.u32 %s611_s15, 2 }
  0x25   : > { %254 = vmatpush.bf16.msra.mxu0 %v396_v0  ;;  %v223_v2 = vld [vmem:[%s193_s11] sm:$0xf]  ;;  %s276_s21 = scalar_lea.hbm %s793_s3, %s392_s23  ;;  %s221_s19 = scalar_lea.vmem [#allocation7], %s379_s30  ;;  %vm262_vm1 = vcmask 519168  }
  0x26   : > { %v472_v3 = vld [vmem:[%s792_s2] ss:$0 sm:$0xff]  ;;  %s278_s22 = sshll.u32 %s221_s19, 4  ;;  %s280_s18 = sshll.u32 %s276_s21, 4  ;;  %s279_s22 = int_to_ptr.vmem [resolvable:$true] %s278_s22  ;;  %s281_s18 = int_to_ptr.hbm [resolvable:$true] %s280_s18 }
  0x27   : > { %s265_s15 = scalar_lea.sflag [#allocation4], %s737_s28  ;;  %s547_s24 = sshra.s32 %s281_s18, 4  ;;  %s548_s24 = int_to_ptr.hbm [resolvable:$true] %s547_s24 }
  0x28   : > { %s549_s25 = scalar_lea.hbm %s548_s24, 4  ;;  %s553_s30 = scalar_lea.hbm %s793_s3, 8 }
  0x29   : > { %255 = vmatpush.bf16.msra.mxu0 %v395_v1  ;;  %p550_p1 = scmp.ne.s32.totalorder %s548_s24, %s549_s25  ;;  %p554_p10 = scmp.lt.s32.totalorder %s548_s24, %s793_s3 }
  0x2a   : > { %p555_p11 = scmp.lt.s32.totalorder %s553_s30, %s549_s25 }
  0x2b   : > { %p551_p3 = pnand %p550_p1, %p715_p4 }
  0x2c   : > { %390 = vmatmul.msk.bf16.vlgmr.msra.gmra.mxu0 %vm244_vm0, %v223_v2  ;;  %p556_p12 = por %p555_p11, %p554_p10 }
  0x2d   : > { %p552_p9 = pneg %p551_p3 }
  0x2f   : > { %p557_p13 = pnand %p556_p12, %p552_p9 }
  0xa9   : > { %v257_v4 = vpop.f32.mrf.mxu0 }
  0xaa   : > { %v258_v5 = vadd.f32 %v472_v3, %v257_v4 }
  0xac   : > { %v261_v6 = vpack.c.bf16 %v258_v5, %v258_v5 }
  0xae   : > { %263 = vst.msk [vmem:[%s221_s19] sm:$0xf] %vm262_vm1, %v261_v6 }
  0xaf   : > { %560 = shalt.err (!%p557_p13)
}
  0xb0   : > { %403 = dma.vmem_to_hbm [thread:$0]  (%p715_p4), %s279_s22, 64, %s281_s18, %s265_s15  }
  0xb1   : > { %v259_v7 = vpop.f32.mrf.mxu0 }
  0xb2 PF: > { %s292_s28 = sand.u32 1, %s599_s12   ;;  %p414_p0 = pnand %p375_p6, %p723_p7 }
  0xb3   : > { %s293_s23 = scalar_lea.sflag [#allocation4], %s292_s28 }
  0xb4   : > { %p415_p2 = pneg %p414_p0 }
  0xb6   : > { %594 = dma.done.wait (%p415_p2), %s293_s23, 64  }
  0xb7   : > { %596 = vsyncadd (%p415_p2), %s293_s23, 4294967232  ;;  %s20_s17 = sadd.s32 1, %s619_s17   ;;  %s800_s12 = smov %s603_s13 }
  0xb8   : > { %p17_p5 = scmp.ge.s32.totalorder %s20_s17, 4   ;;  %s801_s13 = smov %s607_s14 }
  0xb9   : > { %s802_s14 = smov %s721_s8  ;;  %s803_s15 = smov %s615_s16 }
  0xba   : > { %s804_s16 = smov %s806_s29  ;;  %19 = sbr.rel (!%p17_p5) target bundleno = 7 (0x7), region = 81 }
  0xbf   :  { %299 = vsyncpa [#allocation3], 1 }
  0xc0   :  { %301 = vsyncpa [#allocation3 + $0x1], 1 }
  0xc1   :  { %302 = vsyncpa [#allocation6], 1 }
  0xc2   :  { %303 = vsyncpa [#allocation4], 1 }
  0xc3   :  { %305 = vsyncpa [#allocation4 + $0x1], 1 }

</bundles_post_ra>
